<compile_context>
chip_gen: v7x
topology: tpu7x:2x2x1
jax: 0.10.0
libtpu: 0.0.40
codegen_flags: <defaults>
</compile_context>

<pallas_src>
import jax
import jax.numpy as jnp
from jax import lax
from jax.experimental import pallas as pl
from jax.experimental.pallas import tpu as pltpu  # noqa: F401  (kept for parity)


# ------------------------------ Pallas kernel -------------------------------

def _gcncnn_fused_kernel(patches_ref, convw_ref, pool_ref, fcw_ref,
                         emb_ref, adj_ref, w1_ref, w2_ref, o_ref):
    """Fused CNN (conv->ReLU->GAP->FC) + GCN (gc1->LeakyReLU->gc2) + classifier."""
    f32 = jnp.float32
    bf16 = jnp.bfloat16

    # ---- CNN stage --------------------------------------------------------
    # conv bias is driven by the patches' ones column; the last conv channel
    # is an all-ones channel (weight 1 on the ones column) used to fold fc_b.
    conv = jnp.dot(patches_ref[...], convw_ref[...],
                   preferred_element_type=f32)              # (B*HW, Cmid+1)
    conv = jnp.maximum(conv, 0.0)                           # ReLU (ones chan stays 1)
    # global average pool as an MXU matmul with a block-diagonal 1/HW matrix.
    pooled = jnp.dot(pool_ref[...], conv.astype(bf16),
                     preferred_element_type=f32)            # (B, Cmid+1)
    feat = jnp.dot(pooled.astype(bf16), fcw_ref[...],
                   preferred_element_type=f32)              # (B, Dout), fc_b folded

    # ---- GCN stage ---------------------------------------------------------
    adj = adj_ref[...]                                      # (L, L) bf16
    s1 = jnp.dot(emb_ref[...], w1_ref[...],
                 preferred_element_type=f32)                # (L, Dmid)
    h1 = jnp.dot(adj, s1.astype(bf16), preferred_element_type=f32)
    h1 = jnp.where(h1 > 0, h1, 0.2 * h1)                    # LeakyReLU(0.2), f32
    s2 = jnp.dot(h1.astype(bf16), w2_ref[...],
                 preferred_element_type=f32)                # (L, Dout)
    new_emb = jnp.dot(adj, s2.astype(bf16),
                      preferred_element_type=f32)           # (L, Dout)

    # ---- classifier: feature @ new_emb.T (contract over Dout) --------------
    out = lax.dot_general(feat.astype(bf16), new_emb.astype(bf16),
                          dimension_numbers=(((1,), (1,)), ((), ())),
                          preferred_element_type=f32)       # (B, L)
    o_ref[...] = out.astype(o_ref.dtype)


def gcncnn_fused(patches, conv_w_aug, pool, fc_w_aug, emb, adj, w1, w2):
    """One launch; all operands live fully in VMEM (full-array blocks)."""
    BHW, K = patches.shape
    B = pool.shape[0]
    L, Din = emb.shape
    Cmid1 = conv_w_aug.shape[1]
    Dmid = w1.shape[1]
    Dout = fc_w_aug.shape[1]

    def full(shape):
        n = len(shape)
        return pl.BlockSpec(shape, lambda i, _n=n: (0,) * _n)

    return pl.pallas_call(
        _gcncnn_fused_kernel,
        out_shape=jax.ShapeDtypeStruct((B, L), jnp.float32),
        grid=(1,),
        in_specs=[
            full((BHW, K)),        # patches (flattened over batch)
            full((K, Cmid1)),      # conv weight (+bias row, +ones channel)
            full((B, BHW)),        # block-diagonal mean-pool matrix
            full((Cmid1, Dout)),   # fc weight (+fc_b row)
            full((L, Din)),        # emb
            full((L, L)),          # adj
            full((Din, Dmid)),     # gc1 weight
            full((Dmid, Dout)),    # gc2 weight
        ],
        out_specs=full((B, L)),
    )(patches, conv_w_aug, pool, fc_w_aug, emb, adj, w1, w2)


# ------------------------------- glue (JAX) ---------------------------------

def im2col_3x3_same_nhwc(img_nchw):
    """(B, C, H, W) -> (B*H*W, 9*C + 1) patch rows (3x3, pad=1), NHWC path.

    Last-axis concat (no post-concat layout transpose) plus a ones column so
    the conv bias can be folded into the weight matrix.
    """
    B, C, H, W = img_nchw.shape
    x = jnp.transpose(img_nchw, (0, 2, 3, 1))                  # (B, H, W, C)
    xp = jnp.pad(x, ((0, 0), (1, 1), (1, 1), (0, 0)))
    cols = [xp[:, i:i + H, j:j + W, :] for i in range(3) for j in range(3)]
    cols.append(jnp.ones((B, H, W, 1), x.dtype))               # bias column
    patches = jnp.concatenate(cols, axis=-1)                   # (B, H, W, 9C+1)
    return patches.reshape(B * H * W, 9 * C + 1)


@jax.jit
def gcncnn_forward(img, emb, adj, params):
    B, C, H, W = img.shape
    HW = H * W
    bf16 = jnp.bfloat16
    Cmid = params["conv_w"].shape[1]

    patches = im2col_3x3_same_nhwc(img).astype(bf16)           # (B*HW, 9C+1)

    # conv weight augmented with (a) a bias row (hit by the patches' ones
    # column) and (b) an extra all-ones output channel used to fold fc_b.
    K = 9 * C + 1
    convw_aug = jnp.zeros((K, Cmid + 1), jnp.float32)
    convw_aug = convw_aug.at[:9 * C, :Cmid].set(params["conv_w"])
    convw_aug = convw_aug.at[9 * C, :Cmid].set(params["conv_b"])
    convw_aug = convw_aug.at[9 * C, Cmid].set(1.0)
    convw_aug = convw_aug.astype(bf16)

    # block-diagonal mean-pool matrix: GAP becomes a single MXU matmul.
    pool = (jnp.repeat(jnp.eye(B, dtype=jnp.float32), HW, axis=1) / HW).astype(bf16)

    # fc weight with fc_b folded in via the conv's all-ones channel.
    fcw_aug = jnp.concatenate(
        [params["fc_w"], params["fc_b"][None, :]], axis=0).astype(bf16)

    return gcncnn_fused(
        patches, convw_aug, pool, fcw_aug,
        emb.astype(bf16), adj.astype(bf16),
        params["gc1_w"].astype(bf16), params["gc2_w"].astype(bf16))


def reference_forward(img, emb, adj, params):
    """Plain-JAX f32 reference (matches the PyTorch forward semantics)."""
    B, C, H, W = img.shape
    x = jnp.transpose(img, (0, 2, 3, 1))
    xp = jnp.pad(x, ((0, 0), (1, 1), (1, 1), (0, 0)))
    cols = [xp[:, i:i + H, j:j + W, :] for i in range(3) for j in range(3)]
    patches = jnp.concatenate(cols, axis=-1).reshape(B * H * W, 9 * C)
    conv = jnp.maximum(patches @ params["conv_w"] + params["conv_b"], 0.0)
    pooled = jnp.mean(conv.reshape(B, H * W, -1), axis=1)
    feature = pooled @ params["fc_w"] + params["fc_b"]
    h1 = adj @ (emb @ params["gc1_w"])
    h1 = jnp.where(h1 > 0, h1, 0.2 * h1)
    new_emb = adj @ (h1 @ params["gc2_w"])
    return feature @ new_emb.T


# ---------------------------------- main ------------------------------------

if __name__ == "__main__":
    key = jax.random.PRNGKey(0)
    B, C, H, W = 2, 4, 16, 16        # small image batch
    L = 16                           # number of label nodes in the graph
    input_d, middle_d, output_d = 32, 64, 128
    Cmid = 8                         # conv output channels in stand-in CNN

    ks = jax.random.split(key, 8)
    img = jax.random.normal(ks[0], (B, C, H, W), jnp.float32)
    emb = jax.random.normal(ks[1], (L, input_d), jnp.float32)
    adj = jax.random.uniform(ks[2], (L, L), jnp.float32)
    adj = adj / jnp.sum(adj, axis=1, keepdims=True)  # row-normalized adjacency

    # GraphConvolution init: uniform(-stdv, stdv), stdv = 1/sqrt(out_features)
    stdv1 = 1.0 / (middle_d ** 0.5)
    gc1_w = jax.random.uniform(ks[3], (input_d, middle_d), jnp.float32,
                               -stdv1, stdv1)
    stdv2 = 1.0 / (output_d ** 0.5)
    gc2_w = jax.random.uniform(ks[4], (middle_d, output_d), jnp.float32,
                               -stdv2, stdv2)

    # deterministic stand-in CNN weights
    conv_w = jax.random.normal(ks[5], (9 * C, Cmid), jnp.float32) * 0.1
    conv_b = jax.random.normal(ks[6], (Cmid,), jnp.float32) * 0.01
    fc_w = jax.random.normal(ks[7], (Cmid, output_d), jnp.float32) * 0.1
    fc_b = jnp.zeros((output_d,), jnp.float32)

    params = dict(gc1_w=gc1_w, gc2_w=gc2_w,
                  conv_w=conv_w, conv_b=conv_b, fc_w=fc_w, fc_b=fc_b)

    out = gcncnn_forward(img, emb, adj, params)
    out = jax.block_until_ready(out)
    assert out.shape == (B, L), out.shape
    assert out.dtype == jnp.float32

    ref = reference_forward(img, emb, adj, params)
    assert bool(jnp.all(jnp.isfinite(out)))
    assert bool(jnp.allclose(out, ref, rtol=1e-1, atol=1e-1)), \
        float(jnp.max(jnp.abs(out - ref)))

    print("KERNEL_OK")
</pallas_src>

<mosaic_0001>
module attributes {stable_mosaic.version = 11 : i64} {
  func.func @_gcncnn_fused_kernel(%arg0: i32, %arg1: memref<512x37xbf16, #tpu.memory_space<vmem>>, %arg2: memref<37x9xbf16, #tpu.memory_space<vmem>>, %arg3: memref<2x512xbf16, #tpu.memory_space<vmem>>, %arg4: memref<9x128xbf16, #tpu.memory_space<vmem>>, %arg5: memref<16x32xbf16, #tpu.memory_space<vmem>>, %arg6: memref<16x16xbf16, #tpu.memory_space<vmem>>, %arg7: memref<32x64xbf16, #tpu.memory_space<vmem>>, %arg8: memref<64x128xbf16, #tpu.memory_space<vmem>>, %arg9: memref<2x16xf32, #tpu.memory_space<vmem>>) attributes {dimension_semantics = [#tpu.dimension_semantics<arbitrary>], iteration_bounds = array<i64: 1>, scalar_prefetch = 0 : i64, scratch_operands = 0 : i64, tpu.core_type = #tpu.core_type<tc>, window_params = [{pipeline_mode = #tpu.pipeline_mode<synchronous>, transform_indices = @transform_0, window_bounds = array<i64: 512, 37>}, {pipeline_mode = #tpu.pipeline_mode<synchronous>, transform_indices = @transform_1, window_bounds = array<i64: 37, 9>}, {pipeline_mode = #tpu.pipeline_mode<synchronous>, transform_indices = @transform_2, window_bounds = array<i64: 2, 512>}, {pipeline_mode = #tpu.pipeline_mode<synchronous>, transform_indices = @transform_3, window_bounds = array<i64: 9, 128>}, {pipeline_mode = #tpu.pipeline_mode<synchronous>, transform_indices = @transform_4, window_bounds = array<i64: 16, 32>}, {pipeline_mode = #tpu.pipeline_mode<synchronous>, transform_indices = @transform_5, window_bounds = array<i64: 16, 16>}, {pipeline_mode = #tpu.pipeline_mode<synchronous>, transform_indices = @transform_6, window_bounds = array<i64: 32, 64>}, {pipeline_mode = #tpu.pipeline_mode<synchronous>, transform_indices = @transform_7, window_bounds = array<i64: 64, 128>}, {pipeline_mode = #tpu.pipeline_mode<synchronous>, transform_indices = @transform_8, window_bounds = array<i64: 2, 16>}]} {
    %c0 = arith.constant 0 : index
    %c0_0 = arith.constant 0 : index
    %0 = vector.load %arg1[%c0, %c0_0] : memref<512x37xbf16, #tpu.memory_space<vmem>>, vector<512x37xbf16>
    %c0_1 = arith.constant 0 : index
    %c0_2 = arith.constant 0 : index
    %1 = vector.load %arg2[%c0_1, %c0_2] : memref<37x9xbf16, #tpu.memory_space<vmem>>, vector<37x9xbf16>
    %cst = arith.constant dense<0.000000e+00> : vector<512x9xf32>
    %2 = tpu.matmul %0, %1, %cst {dimension_numbers = #tpu.dot_dimension_numbers<[1], [0], [0], [1], [0, 0, 1, 1], [], []>} : vector<512x37xbf16>, vector<37x9xbf16>, vector<512x9xf32> -> vector<512x9xf32>
    %cst_3 = arith.constant 0.000000e+00 : f32
    %3 = vector.broadcast %cst_3 : f32 to vector<512x9xf32>
    %4 = arith.maximumf %2, %3 : vector<512x9xf32>
    %c0_4 = arith.constant 0 : index
    %c0_5 = arith.constant 0 : index
    %5 = vector.load %arg3[%c0_4, %c0_5] : memref<2x512xbf16, #tpu.memory_space<vmem>>, vector<2x512xbf16>
    %6 = arith.truncf %4 : vector<512x9xf32> to vector<512x9xbf16>
    %cst_6 = arith.constant dense<0.000000e+00> : vector<2x9xf32>
    %7 = tpu.matmul %5, %6, %cst_6 {dimension_numbers = #tpu.dot_dimension_numbers<[1], [0], [0], [1], [0, 0, 1, 1], [], []>} : vector<2x512xbf16>, vector<512x9xbf16>, vector<2x9xf32> -> vector<2x9xf32>
    %8 = arith.truncf %7 : vector<2x9xf32> to vector<2x9xbf16>
    %c0_7 = arith.constant 0 : index
    %c0_8 = arith.constant 0 : index
    %9 = vector.load %arg4[%c0_7, %c0_8] : memref<9x128xbf16, #tpu.memory_space<vmem>>, vector<9x128xbf16>
    %cst_9 = arith.constant dense<0.000000e+00> : vector<2x128xf32>
    %10 = tpu.matmul %8, %9, %cst_9 {dimension_numbers = #tpu.dot_dimension_numbers<[1], [0], [0], [1], [0, 0, 1, 1], [], []>} : vector<2x9xbf16>, vector<9x128xbf16>, vector<2x128xf32> -> vector<2x128xf32>
    %c0_10 = arith.constant 0 : index
    %c0_11 = arith.constant 0 : index
    %11 = vector.load %arg6[%c0_10, %c0_11] : memref<16x16xbf16, #tpu.memory_space<vmem>>, vector<16x16xbf16>
    %c0_12 = arith.constant 0 : index
    %c0_13 = arith.constant 0 : index
    %12 = vector.load %arg5[%c0_12, %c0_13] : memref<16x32xbf16, #tpu.memory_space<vmem>>, vector<16x32xbf16>
    %c0_14 = arith.constant 0 : index
    %c0_15 = arith.constant 0 : index
    %13 = vector.load %arg7[%c0_14, %c0_15] : memref<32x64xbf16, #tpu.memory_space<vmem>>, vector<32x64xbf16>
    %cst_16 = arith.constant dense<0.000000e+00> : vector<16x64xf32>
    %14 = tpu.matmul %12, %13, %cst_16 {dimension_numbers = #tpu.dot_dimension_numbers<[1], [0], [0], [1], [0, 0, 1, 1], [], []>} : vector<16x32xbf16>, vector<32x64xbf16>, vector<16x64xf32> -> vector<16x64xf32>
    %15 = arith.truncf %14 : vector<16x64xf32> to vector<16x64xbf16>
    %cst_17 = arith.constant dense<0.000000e+00> : vector<16x64xf32>
    %16 = tpu.matmul %11, %15, %cst_17 {dimension_numbers = #tpu.dot_dimension_numbers<[1], [0], [0], [1], [0, 0, 1, 1], [], []>} : vector<16x16xbf16>, vector<16x64xbf16>, vector<16x64xf32> -> vector<16x64xf32>
    %cst_18 = arith.constant 0.000000e+00 : f32
    %17 = vector.broadcast %cst_18 : f32 to vector<16x64xf32>
    %18 = arith.cmpf ogt, %16, %17 : vector<16x64xf32>
    %cst_19 = arith.constant 2.000000e-01 : f32
    %19 = vector.broadcast %cst_19 : f32 to vector<16x64xf32>
    %20 = arith.mulf %19, %16 : vector<16x64xf32>
    %21 = arith.select %18, %16, %20 : vector<16x64xi1>, vector<16x64xf32>
    %22 = arith.truncf %21 : vector<16x64xf32> to vector<16x64xbf16>
    %c0_20 = arith.constant 0 : index
    %c0_21 = arith.constant 0 : index
    %23 = vector.load %arg8[%c0_20, %c0_21] : memref<64x128xbf16, #tpu.memory_space<vmem>>, vector<64x128xbf16>
    %cst_22 = arith.constant dense<0.000000e+00> : vector<16x128xf32>
    %24 = tpu.matmul %22, %23, %cst_22 {dimension_numbers = #tpu.dot_dimension_numbers<[1], [0], [0], [1], [0, 0, 1, 1], [], []>} : vector<16x64xbf16>, vector<64x128xbf16>, vector<16x128xf32> -> vector<16x128xf32>
    %25 = arith.truncf %24 : vector<16x128xf32> to vector<16x128xbf16>
    %cst_23 = arith.constant dense<0.000000e+00> : vector<16x128xf32>
    %26 = tpu.matmul %11, %25, %cst_23 {dimension_numbers = #tpu.dot_dimension_numbers<[1], [0], [0], [1], [0, 0, 1, 1], [], []>} : vector<16x16xbf16>, vector<16x128xbf16>, vector<16x128xf32> -> vector<16x128xf32>
    %27 = arith.truncf %10 : vector<2x128xf32> to vector<2x128xbf16>
    %28 = arith.truncf %26 : vector<16x128xf32> to vector<16x128xbf16>
    %cst_24 = arith.constant dense<0.000000e+00> : vector<2x16xf32>
    %29 = tpu.matmul %27, %28, %cst_24 {dimension_numbers = #tpu.dot_dimension_numbers<[1], [1], [0], [0], [0, 0, 1, 0], [], []>} : vector<2x128xbf16>, vector<16x128xbf16>, vector<2x16xf32> -> vector<2x16xf32>
    %c0_25 = arith.constant 0 : index
    %c0_26 = arith.constant 0 : index
    %30 = vector.load %arg9[%c0_25, %c0_26] : memref<2x16xf32, #tpu.memory_space<vmem>>, vector<2x16xf32>
    tpu.vector_store %arg9[%c0_25, %c0_26], %29 {strides = array<i32>} : memref<2x16xf32, #tpu.memory_space<vmem>>, vector<2x16xf32>,
    return
  }
  func.func @transform_0(%arg0: i32) -> (i32, i32) {
    %c0_i32 = arith.constant 0 : i32
    %c0_i32_0 = arith.constant 0 : i32
    %c0_i32_1 = arith.constant 0 : i32
    return %c0_i32, %c0_i32_0 : i32, i32
  }
  func.func @transform_1(%arg0: i32) -> (i32, i32) {
    %c0_i32 = arith.constant 0 : i32
    %c0_i32_0 = arith.constant 0 : i32
    %c0_i32_1 = arith.constant 0 : i32
    return %c0_i32, %c0_i32_0 : i32, i32
  }
  func.func @transform_2(%arg0: i32) -> (i32, i32) {
    %c0_i32 = arith.constant 0 : i32
    %c0_i32_0 = arith.constant 0 : i32
    %c0_i32_1 = arith.constant 0 : i32
    return %c0_i32, %c0_i32_0 : i32, i32
  }
  func.func @transform_3(%arg0: i32) -> (i32, i32) {
    %c0_i32 = arith.constant 0 : i32
    %c0_i32_0 = arith.constant 0 : i32
    %c0_i32_1 = arith.constant 0 : i32
    return %c0_i32, %c0_i32_0 : i32, i32
  }
  func.func @transform_4(%arg0: i32) -> (i32, i32) {
    %c0_i32 = arith.constant 0 : i32
    %c0_i32_0 = arith.constant 0 : i32
    %c0_i32_1 = arith.constant 0 : i32
    return %c0_i32, %c0_i32_0 : i32, i32
  }
  func.func @transform_5(%arg0: i32) -> (i32, i32) {
    %c0_i32 = arith.constant 0 : i32
    %c0_i32_0 = arith.constant 0 : i32
    %c0_i32_1 = arith.constant 0 : i32
    return %c0_i32, %c0_i32_0 : i32, i32
  }
  func.func @transform_6(%arg0: i32) -> (i32, i32) {
    %c0_i32 = arith.constant 0 : i32
    %c0_i32_0 = arith.constant 0 : i32
    %c0_i32_1 = arith.constant 0 : i32
    return %c0_i32, %c0_i32_0 : i32, i32
  }
  func.func @transform_7(%arg0: i32) -> (i32, i32) {
    %c0_i32 = arith.constant 0 : i32
    %c0_i32_0 = arith.constant 0 : i32
    %c0_i32_1 = arith.constant 0 : i32
    return %c0_i32, %c0_i32_0 : i32, i32
  }
  func.func @transform_8(%arg0: i32) -> (i32, i32) {
    %c0_i32 = arith.constant 0 : i32
    %c0_i32_0 = arith.constant 0 : i32
    %c0_i32_1 = arith.constant 0 : i32
    return %c0_i32, %c0_i32_0 : i32, i32
  }
}

</mosaic_0001>

<bundles_post_ra>
// kernel: gcncnn_forward.1
= control target key start
LH: loop header
LB: loop body
LE: loop exit
PB: predicated region body
PF: predicated region fallthrough
CT: control target
= control target key end

     0   :  { %vm372_vm0 = vcmask 1041408   ;;  %vm373_vm1 = vcmask 1042432   ;;  %v1602_v3 = vmov 65535   ;;  %vm275_vm2 = vcmask 302080   ;;  %s1870_s0 = inlined_call_operand.vmem [shape: bf16[512,37], index: 0, kind: input, shape index: {}]   ;;  %s1871_s1 = inlined_call_operand.vmem [shape: bf16[37,9], index: 1, kind: input, shape index: {}]   ;;  %s1872_s2 = inlined_call_operand.vmem [shape: bf16[2,512], index: 2, kind: input, shape index: {}]   ;;  %s1873_s3 = inlined_call_operand.vmem [shape: bf16[9,128], index: 3, kind: input, shape index: {}]   ;;  %s1874_s4 = inlined_call_operand.vmem [shape: bf16[16,32], index: 4, kind: input, shape index: {}]   ;;  %s1875_s5 = inlined_call_operand.vmem [shape: bf16[16,16], index: 5, kind: input, shape index: {}]   ;;  %s1876_s6 = inlined_call_operand.vmem [shape: bf16[32,64], index: 6, kind: input, shape index: {}]   ;;  %s1877_s7 = inlined_call_operand.vmem [shape: bf16[64,128], index: 7, kind: input, shape index: {}]   ;;  %s1878_s8 = inlined_call_operand.hbm [shape: f32[2,16], index: 8, kind: output, shape index: {}]  }
   0x1   :  { %v1534_v0 = vld [vmem:[%s1871_s1] sm:$0xff]   ;;  %v1535_v1 = vld [vmem:[%s1871_s1 + $0x8] sm:$0xff]   ;;  %v1536_v2 = vld [vmem:[%s1871_s1 + $0x10] ss:$0 sps:$4 sm:$0x77]   ;;  %v374_v4 = vsel %vm372_vm0, 4294967295, %v1602_v3 }
   0x2   :  { %1415 = vmatprep.subr.bf16.mxu0 %v1534_v0  ;;  %v375_v5 = vsel %vm373_vm1, %v374_v4, 0  ;;  %v1537_v6 = vld [vmem:[%s1870_s0] sm:$0xff]   ;;  %v1538_v8 = vld [vmem:[%s1870_s0 + $0x8] sm:$0xff]   ;;  %v1539_v9 = vld [vmem:[%s1870_s0 + $0x10] sm:$0xff]  }
   0x3   :  { %1416 = vmatpush3.bf16.msra.mxu0 %v1534_v0  ;;  %v377_v7 = vand.u32 %v1536_v2, %v375_v5  ;;  %1421 = vmatprep.mubr.msk.bf16.mxu0 %vm275_vm2, %v1537_v6  ;;  %v1540_v10 = vld [vmem:[%s1870_s0 + $0x18] sm:$0xff]   ;;  %v1541_v11 = vld [vmem:[%s1870_s0 + $0x20] sm:$0xff]   ;;  %v1542_v12 = vld [vmem:[%s1870_s0 + $0x28] sm:$0xff]  }
   0x4   :  { %1417 = vmatprep.subr.bf16.mxu0 %v1535_v1  ;;  %v1543_v13 = vld [vmem:[%s1870_s0 + $0x30] sm:$0xff]   ;;  %v1544_v14 = vld [vmem:[%s1870_s0 + $0x38] sm:$0xff]   ;;  %v1545_v15 = vld [vmem:[%s1870_s0 + $0x40] sm:$0xff]  }
   0x7   :  { %1418 = vmatpush3.bf16.msra.mxu0 %v1535_v1 }
   0x8   :  { %1419 = vmatprep.subr.bf16.mxu0 %v377_v7 }
   0xb   :  { %1420 = vmatpush3.bf16.msra.mxu0 %v377_v7 }
   0xe   :  { %1422 = vmatmul.mubr.msk.bf16.vlgmr.msra.gmra.mrb[0].mxu0 %vm275_vm2, %v1538_v8 }
   0xf   :  { %1425 = vmatprep.mubr.msk.bf16.mxu0 %vm275_vm2, %v1539_v9 }
  0x16   :  { %1426 = vmatmul.mubr.msk.bf16.gmra.mrb[4].mxu0 %vm275_vm2, %v1540_v10 }
  0x17   :  { %1429 = vmatprep.mubr.msk.bf16.mxu0 %vm275_vm2, %v1541_v11 }
  0x1e   :  { %1430 = vmatmul.mubr.msk.bf16.gmra.mrb[8].mxu0 %vm275_vm2, %v1542_v12 }
  0x1f   :  { %1433 = vmatprep.mubr.msk.bf16.mxu0 %vm275_vm2, %v1543_v13 }
  0x26   :  { %1434 = vmatmul.mubr.msk.bf16.gmra.mrb[12].mxu0 %vm275_vm2, %v1544_v14 }
  0x27   :  { %1437 = vmatprep.mubr.msk.bf16.mxu0 %vm275_vm2, %v1545_v15 }
  0x28   :  { %13 = vsyncpa [#allocation3], 0  ;;  %v1546_v16 = vld [vmem:[%s1870_s0 + $0x48] sm:$0xff]   ;;  %v1547_v17 = vld [vmem:[%s1870_s0 + $0x50] sm:$0xff]   ;;  %v1603_v39 = vmov 1966171168   ;;  %v777_v41 = vlaneseq }
  0x29   :  { %v1548_v18 = vld [vmem:[%s1870_s0 + $0x58] sm:$0xff]   ;;  %v1549_v19 = vld [vmem:[%s1870_s0 + $0x60] sm:$0xff]   ;;  %v1550_v20 = vld [vmem:[%s1870_s0 + $0x68] sm:$0xff]   ;;  %v775_v40 = vunpack.c.l.s4 %v1603_v39  ;;  %vm886_vm3 = vcmask 1043456   ;;  %vm887_vm4 = vcmask 1044480   ;;  %vm1605_vm5 = vmmov 0  }
  0x2a   :  { %v1551_v21 = vld [vmem:[%s1870_s0 + $0x70] sm:$0xff]   ;;  %v1552_v22 = vld [vmem:[%s1870_s0 + $0x78] sm:$0xff]   ;;  %v1553_v23 = vld [vmem:[%s1870_s0 + $0x80] sm:$0xff]   ;;  %v778_v43 = vshrl.u32 %v777_v41, 7  ;;  %vm882_vm6 = vcmask 72704   ;;  %vm958_vm7 = vcmask 261120  }
  0x2b   :  { %v1554_v24 = vld [vmem:[%s1870_s0 + $0x88] sm:$0xff]   ;;  %v1555_v25 = vld [vmem:[%s1870_s0 + $0x90] sm:$0xff]   ;;  %v1556_v26 = vld [vmem:[%s1870_s0 + $0x98] sm:$0xff]   ;;  %v776_v42 = vunpack.c.0.s8 %v775_v40  ;;  %vm1009_vm8 = vcmask 130048   ;;  %vm1093_vm11 = vcmask 523264   ;;  %vm1222_vm12 = vcmask 123904  }
  0x2c   :  { %v1557_v27 = vld [vmem:[%s1870_s0 + $0xa0] sm:$0xff]   ;;  %v1558_v28 = vld [vmem:[%s1870_s0 + $0xa8] sm:$0xff]   ;;  %v1559_v29 = vld [vmem:[%s1870_s0 + $0xb0] sm:$0xff]  }
  0x2d   :  { %v1560_v30 = vld [vmem:[%s1870_s0 + $0xb8] sm:$0xff]   ;;  %v1561_v31 = vld [vmem:[%s1870_s0 + $0xc0] sm:$0xff]   ;;  %v1562_v32 = vld [vmem:[%s1870_s0 + $0xc8] sm:$0xff]   ;;  %v779_v46 = vsub.s32 %v776_v42, %v778_v43 }
  0x2e   :  { %1438 = vmatmul.mubr.msk.bf16.gmra.mrb[16].mxu0 %vm275_vm2, %v1546_v16  ;;  %v1563_v33 = vld [vmem:[%s1870_s0 + $0xd0] sm:$0xff]   ;;  %v1564_v34 = vld [vmem:[%s1870_s0 + $0xd8] sm:$0xff]   ;;  %v1565_v35 = vld [vmem:[%s1870_s0 + $0xe0] sm:$0xff]  }
  0x2f   :  { %1441 = vmatprep.mubr.msk.bf16.mxu0 %vm275_vm2, %v1547_v17  ;;  %v1566_v36 = vld [vmem:[%s1870_s0 + $0xe8] sm:$0xff]   ;;  %v1567_v37 = vld [vmem:[%s1870_s0 + $0xf0] sm:$0xff]   ;;  %v1568_v38 = vld [vmem:[%s1870_s0 + $0xf8] sm:$0xff]  }
  0x30   :  { %v1305_v44 = vld.sshfl [vmem:[%s1872_s2] sm:$0x33 pattern:$0x75316420] }
  0x31   :  { %v773_v45 = vcombine.high %v1305_v44, %v1305_v44  ;;  %v1795_v48 = vrot.slane %v1305_v44, %v779_v46 }
  0x33   :  { %v1793_v47 = vrot.slane %v773_v45, %v779_v46 }
  0x35   :  { %826 = vmatprep.mubr.bf16.mxu1 %v1793_v47 }
  0x36   :  { %1442 = vmatmul.mubr.msk.bf16.gmra.mrb[20].mxu0 %vm275_vm2, %v1548_v18 }
  0x37   :  { %1445 = vmatprep.mubr.msk.bf16.mxu0 %vm275_vm2, %v1549_v19 }
  0x3e   :  { %1446 = vmatmul.mubr.msk.bf16.gmra.mrb[24].mxu0 %vm275_vm2, %v1550_v20 }
  0x3f   :  { %1449 = vmatprep.mubr.msk.bf16.mxu0 %vm275_vm2, %v1551_v21 }
  0x46   :  { %1450 = vmatmul.mubr.msk.bf16.gmra.mrb[28].mxu0 %vm275_vm2, %v1552_v22 }
  0x47   :  { %1453 = vmatprep.mubr.msk.bf16.mxu0 %vm275_vm2, %v1553_v23 }
  0x4e   :  { %1454 = vmatmul.mubr.msk.bf16.gmra.mrb[32].mxu0 %vm275_vm2, %v1554_v24 }
  0x4f   :  { %1457 = vmatprep.mubr.msk.bf16.mxu0 %vm275_vm2, %v1555_v25 }
  0x56   :  { %1458 = vmatmul.mubr.msk.bf16.gmra.mrb[36].mxu0 %vm275_vm2, %v1556_v26 }
  0x57   :  { %1461 = vmatprep.mubr.msk.bf16.mxu0 %vm275_vm2, %v1557_v27 }
  0x5e   :  { %1462 = vmatmul.mubr.msk.bf16.gmra.mrb[40].mxu0 %vm275_vm2, %v1558_v28 }
  0x5f   :  { %1465 = vmatprep.mubr.msk.bf16.mxu0 %vm275_vm2, %v1559_v29 }
  0x66   :  { %1466 = vmatmul.mubr.msk.bf16.gmra.mrb[44].mxu0 %vm275_vm2, %v1560_v30 }
  0x67   :  { %1469 = vmatprep.mubr.msk.bf16.mxu0 %vm275_vm2, %v1561_v31 }
  0x6e   :  { %1470 = vmatmul.mubr.msk.bf16.gmra.mrb[48].mxu0 %vm275_vm2, %v1562_v32 }
  0x6f   :  { %1473 = vmatprep.mubr.msk.bf16.mxu0 %vm275_vm2, %v1563_v33 }
  0x76   :  { %1474 = vmatmul.mubr.msk.bf16.gmra.mrb[52].mxu0 %vm275_vm2, %v1564_v34 }
  0x77   :  { %1477 = vmatprep.mubr.msk.bf16.mxu0 %vm275_vm2, %v1565_v35 }
  0x7e   :  { %1478 = vmatmul.mubr.msk.bf16.gmra.mrb[56].mxu0 %vm275_vm2, %v1566_v36 }
  0x7f   :  { %1481 = vmatprep.mubr.msk.bf16.mxu0 %vm275_vm2, %v1567_v37 }
  0x86   :  { %1482 = vmatmul.mubr.msk.bf16.gmra.mrb[60].mxu0 %vm275_vm2, %v1568_v38 }
  0xe1   :  { %v1423_v49 = vpop.f32.mrb[0].mxu0 }
  0xe2   :  { %v413_v50 = vpop.f32.mrb[1].mxu0  ;;  %v670_v52 = vmax.f32 %v1423_v49, 0.0 }
  0xe3   :  { %v1424_v51 = vpop.f32.mrb[2].mxu0  ;;  %v668_v55 = vmax.f32 %v413_v50, 0.0 }
  0xe4   :  { %v671_v53 = vmax.f32 %v1424_v51, 0.0  ;;  %v416_v54 = vpop.f32.mrb[3].mxu0 }
  0xe5   :  { %v669_v56 = vmax.f32 %v416_v54, 0.0 }
  0xe6   :  { %v734_v57 = vpack.c.bf16 %v671_v53, %v670_v52 }
  0xe7   :  { %v733_v58 = vpack.c.bf16 %v669_v56, %v668_v55 }
  0xe9   :  { %v1427_v59 = vpop.f32.mrb[4].mxu0 }
  0xea   :  { %v429_v60 = vpop.f32.mrb[5].mxu0  ;;  %v674_v62 = vmax.f32 %v1427_v59, 0.0 }
  0xeb   :  { %v1428_v61 = vpop.f32.mrb[6].mxu0  ;;  %v672_v1 = vmax.f32 %v429_v60, 0.0 }
  0xec   :  { %v675_v63 = vmax.f32 %v1428_v61, 0.0  ;;  %v432_v0 = vpop.f32.mrb[7].mxu0 }
  0xed   :  { %v673_v2 = vmax.f32 %v432_v0, 0.0 }
  0xee   :  { %v736_v4 = vpack.c.bf16 %v675_v63, %v674_v62 }
  0xef   :  { %v735_v5 = vpack.c.bf16 %v673_v2, %v672_v1 }
  0xf1   :  { %v1431_v6 = vpop.f32.mrb[8].mxu0 }
  0xf2   :  { %v445_v7 = vpop.f32.mrb[9].mxu0  ;;  %v678_v9 = vmax.f32 %v1431_v6, 0.0 }
  0xf3   :  { %v1432_v8 = vpop.f32.mrb[10].mxu0  ;;  %v676_v12 = vmax.f32 %v445_v7, 0.0 }
  0xf4   :  { %v679_v10 = vmax.f32 %v1432_v8, 0.0  ;;  %v448_v11 = vpop.f32.mrb[11].mxu0 }
  0xf5   :  { %v677_v13 = vmax.f32 %v448_v11, 0.0 }
  0xf6   :  { %v738_v14 = vpack.c.bf16 %v679_v10, %v678_v9 }
  0xf7   :  { %v737_v15 = vpack.c.bf16 %v677_v13, %v676_v12 }
  0xf9   :  { %v1435_v16 = vpop.f32.mrb[12].mxu0 }
  0xfa   :  { %v461_v17 = vpop.f32.mrb[13].mxu0  ;;  %v682_v19 = vmax.f32 %v1435_v16, 0.0 }
  0xfb   :  { %v1436_v18 = vpop.f32.mrb[14].mxu0  ;;  %v680_v22 = vmax.f32 %v461_v17, 0.0 }
  0xfc   :  { %v683_v20 = vmax.f32 %v1436_v18, 0.0  ;;  %v464_v21 = vpop.f32.mrb[15].mxu0 }
  0xfd   :  { %v681_v23 = vmax.f32 %v464_v21, 0.0 }
  0xfe   :  { %v1798_v24 = vpack.c.bf16 %v683_v20, %v682_v19 }
  0xff   :  { %v739_v25 = vpack.c.bf16 %v681_v23, %v680_v22 }
 0x101   :  { %v1439_v26 = vpop.f32.mrb[16].mxu0 }
 0x102   :  { %v477_v27 = vpop.f32.mrb[17].mxu0  ;;  %v686_v29 = vmax.f32 %v1439_v26, 0.0 }
 0x103   :  { %v1440_v28 = vpop.f32.mrb[18].mxu0  ;;  %v684_v32 = vmax.f32 %v477_v27, 0.0 }
 0x104   :  { %v687_v30 = vmax.f32 %v1440_v28, 0.0  ;;  %v480_v31 = vpop.f32.mrb[19].mxu0 }
 0x105   :  { %v685_v33 = vmax.f32 %v480_v31, 0.0 }
 0x106   :  { %v742_v34 = vpack.c.bf16 %v687_v30, %v686_v29 }
 0x107   :  { %v741_v35 = vpack.c.bf16 %v685_v33, %v684_v32 }
 0x109   :  { %v1443_v36 = vpop.f32.mrb[20].mxu0  ;;  %1355 = vmatprep.subr.bf16.mxu1 %v741_v35 }
 0x10a   :  { %v493_v37 = vpop.f32.mrb[21].mxu0  ;;  %1356 = vmatpush3.bf16.msra.mxu1 %v733_v58  ;;  %v690_v39 = vmax.f32 %v1443_v36, 0.0 }
 0x10b   :  { %v1444_v38 = vpop.f32.mrb[22].mxu0  ;;  %1357 = vmatprep.subr.bf16.mxu1 %v742_v34  ;;  %v688_v42 = vmax.f32 %v493_v37, 0.0 }
 0x10c   :  { %v691_v40 = vmax.f32 %v1444_v38, 0.0  ;;  %v496_v41 = vpop.f32.mrb[23].mxu0 }
 0x10d   :  { %v689_v43 = vmax.f32 %v496_v41, 0.0 }
 0x10e   :  { %v744_v44 = vpack.c.bf16 %v691_v40, %v690_v39  ;;  %1358 = vmatpush3.bf16.msra.mxu1 %v734_v57 }
 0x10f   :  { %v743_v45 = vpack.c.bf16 %v689_v43, %v688_v42 }
 0x111   :  { %v1447_v46 = vpop.f32.mrb[24].mxu0  ;;  %1359 = vmatprep.subr.bf16.mxu1 %v743_v45 }
 0x112   :  { %v509_v49 = vpop.f32.mrb[25].mxu0  ;;  %1360 = vmatpush3.bf16.msra.mxu1 %v735_v5  ;;  %v694_v51 = vmax.f32 %v1447_v46, 0.0 }
 0x113   :  { %v1448_v50 = vpop.f32.mrb[26].mxu0  ;;  %1361 = vmatprep.subr.bf16.mxu1 %v744_v44  ;;  %v692_v54 = vmax.f32 %v509_v49, 0.0 }
 0x114   :  { %v695_v52 = vmax.f32 %v1448_v50, 0.0  ;;  %v512_v53 = vpop.f32.mrb[27].mxu0 }
 0x115   :  { %v693_v55 = vmax.f32 %v512_v53, 0.0 }
 0x116   :  { %v746_v56 = vpack.c.bf16 %v695_v52, %v694_v51  ;;  %1362 = vmatpush3.bf16.msra.mxu1 %v736_v4 }
 0x117   :  { %v745_v58 = vpack.c.bf16 %v693_v55, %v692_v54 }
 0x119   :  { %v1451_v59 = vpop.f32.mrb[28].mxu0  ;;  %1363 = vmatprep.subr.bf16.mxu1 %v745_v58 }
 0x11a   :  { %v525_v60 = vpop.f32.mrb[29].mxu0  ;;  %1364 = vmatpush3.bf16.msra.mxu1 %v737_v15  ;;  %v698_v61 = vmax.f32 %v1451_v59, 0.0  ;;  %v789_v15 = vcombine.high %v1793_v47, %v1793_v47 }
 0x11b   :  { %v1452_v57 = vpop.f32.mrb[30].mxu0  ;;  %1365 = vmatprep.subr.bf16.mxu1 %v746_v56  ;;  %v696_v0 = vmax.f32 %v525_v60, 0.0 }
 0x11c   :  { %v699_v62 = vmax.f32 %v1452_v57, 0.0  ;;  %v528_v63 = vpop.f32.mrb[31].mxu0 }
 0x11d   :  { %v697_v1 = vmax.f32 %v528_v63, 0.0 }
 0x11e   :  { %v748_v2 = vpack.c.bf16 %v699_v62, %v698_v61  ;;  %1366 = vmatpush3.bf16.msra.mxu1 %v738_v14 }
 0x11f   :  { %v747_v5 = vpack.c.bf16 %v697_v1, %v696_v0 }
 0x121   :  { %v1455_v6 = vpop.f32.mrb[32].mxu0  ;;  %1367 = vmatprep.subr.bf16.mxu1 %v747_v5 }
 0x122   :  { %v541_v7 = vpop.f32.mrb[33].mxu0  ;;  %1368 = vmatpush3.bf16.msra.mxu1 %v739_v25  ;;  %v702_v8 = vmax.f32 %v1455_v6, 0.0 }
 0x123   :  { %v1456_v4 = vpop.f32.mrb[34].mxu0  ;;  %1369 = vmatprep.subr.bf16.mxu1 %v748_v2  ;;  %v700_v11 = vmax.f32 %v541_v7, 0.0 }
 0x124   :  { %v703_v9 = vmax.f32 %v1456_v4, 0.0  ;;  %v544_v10 = vpop.f32.mrb[35].mxu0 }
 0x125   :  { %v701_v12 = vmax.f32 %v544_v10, 0.0 }
 0x126   :  { %v750_v13 = vpack.c.bf16 %v703_v9, %v702_v8  ;;  %1370 = vmatpush3.bf16.msra.mxu1 %v1798_v24 }
 0x127   :  { %v749_v16 = vpack.c.bf16 %v701_v12, %v700_v11 }
 0x129   :  { %v1459_v14 = vpop.f32.mrb[36].mxu0  ;;  %827 = vmatmul.mubr.bf16.vlgmr.msra.gmra.mrb[0].mxu1 %v1795_v48 }
 0x12a   :  { %v557_v17 = vpop.f32.mrb[37].mxu0  ;;  %866 = vmatprep.mubr.bf16.mxu1 %v789_v15  ;;  %v706_v19 = vmax.f32 %v1459_v14, 0.0 }
 0x12b   :  { %v1460_v18 = vpop.f32.mrb[38].mxu0  ;;  %v704_v22 = vmax.f32 %v557_v17, 0.0 }
 0x12c   :  { %v707_v20 = vmax.f32 %v1460_v18, 0.0  ;;  %v560_v21 = vpop.f32.mrb[39].mxu0 }
 0x12d   :  { %v705_v23 = vmax.f32 %v560_v21, 0.0 }
 0x12e   :  { %v752_v25 = vpack.c.bf16 %v707_v20, %v706_v19 }
 0x12f   :  { %v751_v26 = vpack.c.bf16 %v705_v23, %v704_v22 }
 0x131   :  { %v1463_v27 = vpop.f32.mrb[40].mxu0 }
 0x132   :  { %v573_v28 = vpop.f32.mrb[41].mxu0  ;;  %v710_v29 = vmax.f32 %v1463_v27, 0.0  ;;  %v1569_v27 = vld [vmem:[%s1873_s3] sm:$0x1f]  }
 0x133   :  { %v1464_v24 = vpop.f32.mrb[42].mxu0  ;;  %v708_v31 = vmax.f32 %v573_v28, 0.0 }
 0x134   :  { %v711_v30 = vmax.f32 %v1464_v24, 0.0  ;;  %v576_v47 = vpop.f32.mrb[43].mxu0 }
 0x135   :  { %v709_v32 = vmax.f32 %v576_v47, 0.0 }
 0x136   :  { %v754_v33 = vpack.c.bf16 %v711_v30, %v710_v29  ;;  %v1604_v29 = vmov 0.0  }
 0x137   :  { %v753_v34 = vpack.c.bf16 %v709_v32, %v708_v31 }
 0x139   :  { %v1467_v35 = vpop.f32.mrb[44].mxu0 }
 0x13a   :  { %v589_v36 = vpop.f32.mrb[45].mxu0  ;;  %v714_v38 = vmax.f32 %v1467_v35, 0.0 }
 0x13b   :  { %v1468_v37 = vpop.f32.mrb[46].mxu0  ;;  %v712_v41 = vmax.f32 %v589_v36, 0.0 }
 0x13c   :  { %v715_v39 = vmax.f32 %v1468_v37, 0.0  ;;  %v592_v40 = vpop.f32.mrb[47].mxu0 }
 0x13d   :  { %v713_v42 = vmax.f32 %v592_v40, 0.0  ;;  %v1571_v40 = vld [vmem:[%s1876_s6 + $0x8] sm:$0xff]  }
 0x13e   :  { %v756_v43 = vpack.c.bf16 %v715_v39, %v714_v38  ;;  %v1570_v38 = vld [vmem:[%s1876_s6] sm:$0xff]  }
 0x13f   :  { %v755_v44 = vpack.c.bf16 %v713_v42, %v712_v41  ;;  %v1572_v41 = vld [vmem:[%s1874_s4] sm:$0xff]  }
 0x141   :  { %v1471_v45 = vpop.f32.mrb[48].mxu0 }
 0x142   :  { %v605_v46 = vpop.f32.mrb[49].mxu0  ;;  %v718_v50 = vmax.f32 %v1471_v45, 0.0 }
 0x143   :  { %v1472_v49 = vpop.f32.mrb[50].mxu0  ;;  %v716_v53 = vmax.f32 %v605_v46, 0.0 }
 0x144   :  { %v719_v51 = vmax.f32 %v1472_v49, 0.0  ;;  %v608_v52 = vpop.f32.mrb[51].mxu0 }
 0x145   :  { %v717_v54 = vmax.f32 %v608_v52, 0.0 }
 0x146   :  { %v758_v55 = vpack.c.bf16 %v719_v51, %v718_v50 }
 0x147   :  { %v757_v56 = vpack.c.bf16 %v717_v54, %v716_v53  ;;  %v1573_v53 = vld [vmem:[%s1875_s5] sm:$0xff]  }
 0x148   :  { %v1574_v54 = vld [vmem:[%s1877_s7] sm:$0xff]  }
 0x149   :  { %v1475_v58 = vpop.f32.mrb[52].mxu0  ;;  %1377 = vmatprep.subr.bf16.mxu1 %v757_v56  ;;  %v1576_v56 = vld [vmem:[%s1877_s7 + $0x10] sm:$0xff]  }
 0x14a   :  { %v621_v59 = vpop.f32.mrb[53].mxu0  ;;  %1378 = vmatpush3.bf16.msra.mxu1 %v749_v16  ;;  %v722_v57 = vmax.f32 %v1475_v58, 0.0  ;;  %v1577_v58 = vld [vmem:[%s1877_s7 + $0x18] sm:$0xff]  }
 0x14b   :  { %v1476_v60 = vpop.f32.mrb[54].mxu0  ;;  %1379 = vmatprep.subr.bf16.mxu1 %v758_v55  ;;  %v720_v63 = vmax.f32 %v621_v59, 0.0  ;;  %v1575_v55 = vld [vmem:[%s1877_s7 + $0x8] sm:$0xff]   ;;  %s1606_s7 = smov [#allocation2]  }
 0x14c   :  { %v723_v61 = vmax.f32 %v1476_v60, 0.0  ;;  %v624_v62 = vpop.f32.mrb[55].mxu0  ;;  %s1230_s19 = sshll.u32 %s1606_s7, 4  ;;  %s1231_s19 = int_to_ptr.vmem [resolvable:$true] %s1230_s19 }
 0x14d   :  { %v721_v0 = vmax.f32 %v624_v62, 0.0  ;;  %s1578_s20 = scalar_lea.vmem %s1231_s19, 32  ;;  %p1583_p1 = scmp.lt.s32.totalorder %s1231_s19, %s1231_s19 }
 0x14e   :  { %v760_v1 = vpack.c.bf16 %v723_v61, %v722_v57  ;;  %1380 = vmatpush3.bf16.msra.mxu1 %v750_v13  ;;  %p1579_p0 = scmp.ne.s32.totalorder %s1231_s19, %s1578_s20  ;;  %p1584_p2 = scmp.lt.s32.totalorder %s1578_s20, %s1578_s20 }
 0x14f   :  { %v759_v2 = vpack.c.bf16 %v721_v0, %v720_v63 }
 0x150   :  { %p1585_p3 = por %p1584_p2, %p1583_p1 }
 0x151   :  { %v1479_v5 = vpop.f32.mrb[56].mxu0  ;;  %1381 = vmatprep.subr.bf16.mxu1 %v759_v2 }
 0x152   :  { %v637_v6 = vpop.f32.mrb[57].mxu0  ;;  %1382 = vmatpush3.bf16.msra.mxu1 %v751_v26  ;;  %v726_v4 = vmax.f32 %v1479_v5, 0.0  ;;  %v888_v26 = vsel %vm886_vm3, 4294967295, %v1602_v3  ;;  %p1586_p4 = pnand %p1585_p3, %p1579_p0 }
 0x153   :  { %v1480_v7 = vpop.f32.mrb[58].mxu0  ;;  %1383 = vmatprep.subr.bf16.mxu1 %v760_v1  ;;  %v724_v10 = vmax.f32 %v637_v6, 0.0  ;;  %v889_v28 = vsel %vm887_vm4, %v888_v26, 0 }
 0x154   :  { %v727_v8 = vmax.f32 %v1480_v7, 0.0  ;;  %v640_v9 = vpop.f32.mrb[59].mxu0  ;;  %v891_v24 = vand.u32 %v1569_v27, %v889_v28 }
 0x155   :  { %v725_v11 = vmax.f32 %v640_v9, 0.0 }
 0x156   :  { %v762_v12 = vpack.c.bf16 %v727_v8, %v726_v4  ;;  %1384 = vmatpush3.bf16.msra.mxu1 %v752_v25  ;;  %v788_v25 = vcombine.high %v1795_v48, %v1795_v48 }
 0x157   :  { %v761_v15 = vpack.c.bf16 %v725_v11, %v724_v10 }
 0x159   :  { %v1483_v16 = vpop.f32.mrb[60].mxu0  ;;  %1385 = vmatprep.subr.bf16.mxu1 %v761_v15 }
 0x15a   :  { %v653_v14 = vpop.f32.mrb[61].mxu0  ;;  %1386 = vmatpush3.bf16.msra.mxu1 %v753_v34  ;;  %v730_v17 = vmax.f32 %v1483_v16, 0.0 }
 0x15b   :  { %v1484_v13 = vpop.f32.mrb[62].mxu0  ;;  %1387 = vmatprep.subr.bf16.mxu1 %v762_v12  ;;  %v728_v20 = vmax.f32 %v653_v14, 0.0 }
 0x15c   :  { %v731_v18 = vmax.f32 %v1484_v13, 0.0  ;;  %v656_v19 = vpop.f32.mrb[63].mxu0 }
 0x15d   :  { %v729_v21 = vmax.f32 %v656_v19, 0.0 }
 0x15e   :  { %v764_v22 = vpack.c.bf16 %v731_v18, %v730_v17  ;;  %1388 = vmatpush3.bf16.msra.mxu1 %v754_v33 }
 0x15f   :  { %v763_v23 = vpack.c.bf16 %v729_v21, %v728_v20 }
 0x161   :  { %1389 = vmatprep.subr.bf16.mxu1 %v763_v23 }
 0x162   :  { %1390 = vmatpush3.bf16.msra.mxu1 %v755_v44 }
 0x163   :  { %1391 = vmatprep.subr.bf16.mxu1 %v764_v22 }
 0x166   :  { %1392 = vmatpush3.bf16.msra.mxu1 %v756_v43 }
 0x167   :  { %1485 = vmatprep.subr.bf16.mxu1 %v1604_v29 }
 0x169   :  { %867 = vmatmul.mubr.bf16.vlgmr.msra.gmra.mrb[4].mxu1 %v788_v25 }
 0x16a   :  { %1486 = vmatpush3.bf16.msra.mxu1 %v891_v24  ;;  %1487 = vmatprep.mubr.msk.bf16.mxu1 %vm1605_vm5, %v1604_v29 }
 0x16b   :  { %1491 = vmatprep.subr.bf16.mxu1 %v1604_v29 }
 0x1fc   :  { %v1371_v48 = vpop.f32.mrb[0].mxu1 }
 0x1fd   :  { %v1372_v30 = vpop.f32.mrb[1].mxu1 }
 0x1fe   :  { %v1373_v3 = vadd.f32 %v1372_v30, %v1371_v48  ;;  %v1374_v47 = vpop.f32.mrb[2].mxu1 }
 0x1ff   :  { %v1375_v31 = vpop.f32.mrb[3].mxu1 }
 0x23c   :  { %v1393_v32 = vpop.f32.mrb[4].mxu1 }
 0x23d   :  { %v1394_v33 = vpop.f32.mrb[5].mxu1 }
 0x23e   :  { %v1395_v34 = vadd.f32 %v1394_v33, %v1393_v32  ;;  %v1396_v35 = vpop.f32.mrb[6].mxu1 }
 0x23f   :  { %v1397_v36 = vpop.f32.mrb[7].mxu1 }
 0x240   :  { %v869_v37 = vadd.f32 %v1395_v34, %v1373_v3 }
 0x242   :  { %v874_v39 = vpack.c.bf16 %v869_v37, %v869_v37 }
 0x244   :  { %1488 = vmatmul.mubr.msk.bf16.vlgmr.msra.gmra.mrb[8].mxu1 %vm882_vm6, %v874_v39 }
 0x245   :  { %1492 = vmatpush3.bf16.msra.mxu1 %v1570_v38  ;;  %1495 = vmatprep.mubr.msk.bf16.mxu1 %vm1605_vm5, %v1604_v29 }
 0x246   :  { %1493 = vmatprep.subr.bf16.mxu1 %v1604_v29 }
 0x249   :  { %1494 = vmatpush3.bf16.msra.mxu1 %v1571_v40 }
 0x24a   :  { %1499 = vmatprep.subr.bf16.mxu1 %v1604_v29 }
 0x24c   :  { %1496 = vmatmul.mubr.msk.bf16.vlgmr.msra.gmra.mrb[12].mxu1 %vm958_vm7, %v1572_v41 }
 0x24d   :  { %1501 = vmatprep.mubr.msk.bf16.mxu1 %vm1605_vm5, %v1604_v29 }
 0x317   :  { %v927_v42 = vpop.f32.mrb[8].mxu1 }
 0x318   :  { %v1489_v43 = vpop.f32.mrb[9].mxu1  ;;  %v1180_v16 = vpack.c.bf16 %v927_v42, %v927_v42 }
 0x319   :  { %v930_v44 = vpop.f32.mrb[10].mxu1 }
 0x31a   :  { %v1490_v45 = vpop.f32.mrb[11].mxu1 }
 0x31f   :  { %v996_v46 = vpop.f32.mrb[12].mxu1 }
 0x320   :  { %v1497_v49 = vpop.f32.mrb[13].mxu1 }
 0x321   :  { %v999_v50 = vpop.f32.mrb[14].mxu1 }
 0x322   :  { %v1003_v51 = vpack.c.bf16 %v999_v50, %v996_v46  ;;  %v1498_v52 = vpop.f32.mrb[15].mxu1 }
 0x324   :  { %1500 = vmatpush3.bf16.msra.mxu1 %v1003_v51 }
 0x325   :  { %1505 = vmatprep.subr.bf16.mxu1 %v1604_v29 }
 0x327   :  { %1502 = vmatmul.mubr.msk.bf16.vlgmr.msra.gmra.mrb[16].mxu1 %vm1009_vm8, %v1573_v53 }
 0x328   :  { %1506 = vmatpush3.bf16.msra.mxu1 %v1574_v54  ;;  %1513 = vmatprep.mubr.msk.bf16.mxu1 %vm1605_vm5, %v1604_v29 }
 0x329   :  { %1507 = vmatprep.subr.bf16.mxu1 %v1604_v29 }
 0x32c   :  { %1508 = vmatpush3.bf16.msra.mxu1 %v1575_v55 }
 0x32d   :  { %1509 = vmatprep.subr.bf16.mxu1 %v1604_v29 }
 0x330   :  { %1510 = vmatpush3.bf16.msra.mxu1 %v1576_v56 }
 0x331   :  { %1511 = vmatprep.subr.bf16.mxu1 %v1604_v29 }
 0x334   :  { %1512 = vmatpush3.bf16.msra.mxu1 %v1577_v58 }
 0x335   :  { %1517 = vmatprep.subr.bf16.mxu1 %v1604_v29 }
 0x3fa   :  { %v1047_v59 = vpop.f32.mrb[16].mxu1 }
 0x3fb   :  { %v1056_v60 = vmul.f32 0.2, %v1047_v59  ;;  %v1503_v57 = vpop.f32.mrb[17].mxu1  ;;  %vm1054_vm9 = vcmp.gt.f32.partialorder %v1047_v59, 0.0 }
 0x3fc   :  { %v1050_v61 = vpop.f32.mrb[18].mxu1 }
 0x3fd   :  { %vm1055_vm10 = vcmp.gt.f32.partialorder %v1050_v61, 0.0  ;;  %v1057_v62 = vmul.f32 0.2, %v1050_v61  ;;  %v1504_v63 = vpop.f32.mrb[19].mxu1  ;;  %v1058_v0 = vsel %vm1054_vm9, %v1047_v59, %v1056_v60 }
 0x3ff   :  { %v1059_v1 = vsel %vm1055_vm10, %v1050_v61, %v1057_v62 }
 0x400   :  { %v1060_v2 = vpack.c.bf16 %v1059_v1, %v1058_v0 }
 0x402   :  { %1514 = vmatmul.mubr.msk.bf16.vlgmr.msra.gmra.mrb[20].mxu1 %vm1093_vm11, %v1060_v2 }
 0x403   :  { %1519 = vmatprep.mubr.msk.bf16.mxu1 %vm1605_vm5, %v1604_v29 }
 0x4d5   :  { %v1131_v5 = vpop.f32.mrb[20].mxu1 }
 0x4d6   :  { %v1515_v6 = vpop.f32.mrb[21].mxu1 }
 0x4d7   :  { %v1134_v7 = vpop.f32.mrb[22].mxu1 }
 0x4d8   :  { %v1138_v4 = vpack.c.bf16 %v1134_v7, %v1131_v5  ;;  %v1516_v8 = vpop.f32.mrb[23].mxu1 }
 0x4da   :  { %1518 = vmatpush3.bf16.msra.mxu1 %v1138_v4 }
 0x4db   :  { %1523 = vmatprep.subr.bf16.mxu1 %v1604_v29 }
 0x4dd   :  { %1520 = vmatmul.mubr.msk.bf16.vlgmr.msra.gmra.mrb[24].mxu1 %vm1009_vm8, %v1573_v53 }
 0x4de   :  { %1525 = vmatprep.mubr.msk.bf16.mxu1 %vm1605_vm5, %v1604_v29 }
 0x5b0   :  { %v1173_v9 = vpop.f32.mrb[24].mxu1 }
 0x5b1   :  { %v1521_v10 = vpop.f32.mrb[25].mxu1 }
 0x5b2   :  { %v1176_v11 = vpop.f32.mrb[26].mxu1 }
 0x5b3   :  { %v1181_v12 = vpack.c.bf16 %v1176_v11, %v1173_v9  ;;  %v1522_v15 = vpop.f32.mrb[27].mxu1 }
 0x5b5   :  { %1524 = vmatpush3.bf16.xpose.msra.mxu1 %v1181_v12 }
 0x5bc   :  { %1526 = vmatmul.mubr.bf16.vlgmr.msra.gmra.mrb[28].mxu1 %v1180_v16 }
 0x68f   :  { %v1216_v14 = vpop.f32.mrb[28].mxu1 }
 0x690   :  { %1223 = vst.msk [vmem:[#allocation2] sm:$0x3] %vm1222_vm12, %v1216_v14  ;;  %v1527_v13 = vpop.f32.mrb[29].mxu1 }
 0x691   :  { %v1219_v17 = vpop.f32.mrb[30].mxu1 }
 0x692   :  { %1589 = shalt.err (!%p1586_p4)
}
 0x693   :  { %s1590_s23 = scalar_lea.hbm %s1878_s8, 32 }
 0x694   :  { %p1591_p5 = scmp.ne.s32.totalorder %s1878_s8, %s1590_s23  ;;  %p1594_p6 = scmp.lt.u32.totalorder %s1590_s23, %s1878_s8 }
 0x696   :  { %p1596_p7 = pnand %p1594_p6, %p1591_p5 }
 0x698   :  { %1599 = shalt.err (!%p1596_p7)
}
 0x699   :  { %1233 = dma.vmem_to_hbm [thread:$0]  %s1231_s19, 32, %s1878_s8, [#allocation3]   ;;  %v1528_v18 = vpop.f32.mrb[31].mxu1 }
 0x69a   :  { %1600 = dma.done.wait [#allocation3], 32  }
 0x69b   :  { %1601 = vsyncadd [#allocation3], 4294967264 }
 0x69c   :  { %1237 = vsyncpa [#allocation3], 1 }

</bundles_post_ra>
